<compile_context>
chip_gen: v5e
topology: v5e:2x2
jax: 0.10.0
libtpu: 0.0.40
codegen_flags: <defaults>
</compile_context>

<pallas_src>
import functools
import numpy as np
import jax
import jax.numpy as jnp
from jax.experimental import pallas as pl
from jax.experimental.pallas import tpu as pltpu

F32 = jnp.float32
BF16 = jnp.bfloat16


def _round_up(x, m):
    return (x + m - 1) // m * m


# ----------------------------- Pallas kernels --------------------------------

def _lat_chain_kernel(e0_ref, hyp_ref, lat_out_ref, lat_sc, *, layer_nums):
    """Fused layer chain, reduction half.

    grid = (side, pass p, row tile k).  Pass p accumulates
        lat_{p+1} = sum_k adj_k^T @ cur_{p,k}
    into the VMEM scratch, where cur_0 = E0 and
    cur_p = F.normalize(adj @ lat_p) for p >= 1.  adj = E0_k @ Hyp is
    recomputed on-tile.  The full lat stack is flushed to HBM (bf16) once per
    side, on that side's last grid step.
    """
    p = pl.program_id(1)
    k = pl.program_id(2)
    n_tiles = pl.num_programs(2)

    @pl.when((p == 0) & (k == 0))
    def _init():
        lat_sc[...] = jnp.zeros_like(lat_sc)

    e0 = e0_ref[0]                                                     # (tm, D) bf16
    adj = jnp.dot(e0, hyp_ref[0], preferred_element_type=F32).astype(BF16)  # (tm, H)

    @pl.when(p == 0)
    def _first():
        # lat_1 += adj^T @ E0
        lat_sc[0] = lat_sc[0] + jax.lax.dot_general(
            adj, e0, (((0,), (0,)), ((), ())), preferred_element_type=F32)

    # Statically unrolled over layers (layer_nums is a Python constant); only
    # the branch matching the current pass executes.
    for l in range(1, layer_nums):
        @pl.when(p == l)
        def _mid(l=l):
            lat_prev = lat_sc[l - 1].astype(BF16)                      # (H, D)
            ret = jnp.dot(adj, lat_prev, preferred_element_type=F32)   # (tm, D) f32
            inv = jax.lax.rsqrt(jnp.maximum(
                jnp.sum(ret * ret, axis=-1, keepdims=True), 1e-24))
            norm = (ret * inv).astype(BF16)
            # lat_{l+1} += adj^T @ norm
            lat_sc[l] = lat_sc[l] + jax.lax.dot_general(
                adj, norm, (((0,), (0,)), ((), ())), preferred_element_type=F32)

    @pl.when((p == layer_nums - 1) & (k == n_tiles - 1))
    def _flush():
        lat_out_ref[0] = lat_sc[...].astype(lat_out_ref.dtype)


def _hyper_out_kernel(e0_ref, hyp_ref, lat_ref, out_ref, *, layer_nums):
    """Output half (row-parallel): out_k = sum_{l=1..L} F.normalize(adj_k @ lat_l).

    All lat_l are tiny and resident in VMEM, so each output row tile is written
    exactly once and there is no running-sum read/modify/write HBM stream.
    """
    e0 = e0_ref[0]                                                     # (tm, D) bf16
    adj = jnp.dot(e0, hyp_ref[0], preferred_element_type=F32).astype(BF16)  # (tm, H)
    acc = jnp.zeros(out_ref.shape[1:], F32)                            # (tm, D)
    for l in range(layer_nums):
        ret = jnp.dot(adj, lat_ref[0, l], preferred_element_type=F32)  # (tm, D) f32
        inv = jax.lax.rsqrt(jnp.maximum(
            jnp.sum(ret * ret, axis=-1, keepdims=True), 1e-24))
        acc = acc + ret * inv
    out_ref[0] = acc


# ------------------------------ wrapper ---------------------------------------

def hyper_behavior_gcn_forward(embeds, u_hyper, i_hyper, *, n_users, n_items,
                               layer_nums=2, row_tile=2048):
    embeds = jax.lax.stop_gradient(embeds)                # embeds.detach()
    # TODO(synk): hyper_dropout on uuHyper/iiHyper is identity (eval mode); the
    # LeakyReLU `act` member is defined but unused by forward().
    if layer_nums == 0:
        return embeds

    Mu = n_users + 1
    Mi = n_items + 1
    D = embeds.shape[1]
    H = u_hyper.shape[1]
    L = layer_nums

    Mmax = max(Mu, Mi)
    tm = min(row_tile, _round_up(Mmax, 8))                # row tile (>=8, <=2048)
    Mp = _round_up(Mmax, tm)
    n_tiles = Mp // tm

    # Side-stacked, row-padded bf16 operands.  No D/H padding: block trailing
    # dims equal the full array dims (allowed), so the native lane widths are
    # kept and HBM traffic / MXU work is not inflated.
    e0 = jnp.zeros((2, Mp, D), BF16)
    e0 = e0.at[0, :Mu].set(embeds[:Mu].astype(BF16))
    e0 = e0.at[1, :Mi].set(embeds[Mu:].astype(BF16))
    hyp = jnp.stack([u_hyper, i_hyper]).astype(BF16)      # (2, D, H)

    # ---- Call A: fused layer chain (lat stack in VMEM scratch) ----
    lat_all = pl.pallas_call(
        functools.partial(_lat_chain_kernel, layer_nums=L),
        grid=(2, L, n_tiles),
        in_specs=[pl.BlockSpec((1, tm, D), lambda s, p, k: (s, k, 0)),
                  pl.BlockSpec((1, D, H), lambda s, p, k: (s, 0, 0))],
        out_specs=pl.BlockSpec((1, L, H, D), lambda s, p, k: (s, 0, 0, 0)),
        out_shape=jax.ShapeDtypeStruct((2, L, H, D), BF16),
        scratch_shapes=[pltpu.VMEM((L, H, D), F32)],
        compiler_params=pltpu.CompilerParams(
            dimension_semantics=("parallel", "arbitrary", "arbitrary")),
    )(e0, hyp)

    # ---- Call B: per-row output, fully parallel, one HBM write per row ----
    hyper = pl.pallas_call(
        functools.partial(_hyper_out_kernel, layer_nums=L),
        grid=(2, n_tiles),
        in_specs=[pl.BlockSpec((1, tm, D), lambda s, k: (s, k, 0)),
                  pl.BlockSpec((1, D, H), lambda s, k: (s, 0, 0)),
                  pl.BlockSpec((1, L, H, D), lambda s, k: (s, 0, 0, 0))],
        out_specs=pl.BlockSpec((1, tm, D), lambda s, k: (s, k, 0)),
        out_shape=jax.ShapeDtypeStruct((2, Mp, D), F32),
        compiler_params=pltpu.CompilerParams(
            dimension_semantics=("parallel", "parallel")),
    )(e0, hyp, lat_all)

    hyper_sum = jnp.concatenate([hyper[0, :Mu], hyper[1, :Mi]], axis=0)
    # lats = [embeds, norm_1, ..., norm_L];  output = sum(lats) / len(lats)
    return (embeds + hyper_sum) / float(L + 1)


# ------------------------ pure-JAX reference (f32) -----------------------------

def _reference(embeds, u_hyper, i_hyper, n_users, n_items, layer_nums=2):
    lats = [embeds]
    ue0 = embeds[: n_users + 1]
    ie0 = embeds[n_users + 1:]
    uu = ue0 @ u_hyper
    ii = ie0 @ i_hyper
    for _ in range(layer_nums):
        cur = lats[-1]
        ue = cur[: n_users + 1]
        ie = cur[n_users + 1:]
        hu = uu @ (uu.T @ ue)
        hi = ii @ (ii.T @ ie)
        h = jnp.concatenate([hu, hi], axis=0)
        nrm = jnp.sqrt(jnp.sum(h * h, axis=-1, keepdims=True))
        lats.append(h / jnp.maximum(nrm, 1e-12))
    return sum(lats) / len(lats)


if __name__ == "__main__":
    # args: embedding_size=32, hyper_nums=16, hyper_dropout -> eval; n_users=n_items=15
    n_users, n_items = 15, 15
    embedding_size, hyper_nums, layer_nums = 32, 16, 2
    n_nodes = n_users + n_items + 2

    key = jax.random.PRNGKey(0)
    k_e, k_u, k_i = jax.random.split(key, 3)

    def xavier(k, shape):
        a = float(np.sqrt(6.0 / (shape[0] + shape[1])))
        return jax.random.uniform(k, shape, F32, -a, a)

    embeds = jax.random.normal(k_e, (n_nodes, embedding_size), F32) * 0.1
    u_hyper = xavier(k_u, (embedding_size, hyper_nums))
    i_hyper = xavier(k_i, (embedding_size, hyper_nums))

    fwd = jax.jit(functools.partial(hyper_behavior_gcn_forward,
                                    n_users=n_users, n_items=n_items,
                                    layer_nums=layer_nums))
    out = jax.block_until_ready(fwd(embeds, u_hyper, i_hyper))

    ref = _reference(embeds, u_hyper, i_hyper, n_users, n_items, layer_nums)
    err = float(jnp.max(jnp.abs(out - ref)))
    assert out.shape == (n_nodes, embedding_size)
    assert np.isfinite(err) and err < 5e-2, f"max abs error {err}"
    print("KERNEL_OK")
</pallas_src>

<mosaic_0001>
module attributes {stable_mosaic.version = 11 : i64} {
  func.func @_hyper_out_kernel(%arg0: i32, %arg1: i32, %arg2: memref<1x16x32xbf16, #tpu.memory_space<vmem>>, %arg3: memref<1x32x16xbf16, #tpu.memory_space<vmem>>, %arg4: memref<1x2x16x32xbf16, #tpu.memory_space<vmem>>, %arg5: memref<1x16x32xf32, #tpu.memory_space<vmem>>) attributes {dimension_semantics = [#tpu.dimension_semantics<parallel>, #tpu.dimension_semantics<parallel>], iteration_bounds = array<i64: 2, 1>, scalar_prefetch = 0 : i64, scratch_operands = 0 : i64, tpu.core_type = #tpu.core_type<tc>, window_params = [{transform_indices = @transform_0, window_bounds = array<i64: 1, 16, 32>}, {transform_indices = @transform_1, window_bounds = array<i64: 1, 32, 16>}, {transform_indices = @transform_2, window_bounds = array<i64: 1, 2, 16, 32>}, {transform_indices = @transform_3, window_bounds = array<i64: 1, 16, 32>}]} {
    %c0 = arith.constant 0 : index
    %c0_0 = arith.constant 0 : index
    %c0_1 = arith.constant 0 : index
    %0 = vector.load %arg2[%c0, %c0_0, %c0_1] : memref<1x16x32xbf16, #tpu.memory_space<vmem>>, vector<1x16x32xbf16>
    %1 = vector.shape_cast %0 : vector<1x16x32xbf16> to vector<16x32xbf16>
    %c0_2 = arith.constant 0 : index
    %c0_3 = arith.constant 0 : index
    %c0_4 = arith.constant 0 : index
    %2 = vector.load %arg3[%c0_2, %c0_3, %c0_4] : memref<1x32x16xbf16, #tpu.memory_space<vmem>>, vector<1x32x16xbf16>
    %3 = vector.shape_cast %2 : vector<1x32x16xbf16> to vector<32x16xbf16>
    %cst = arith.constant dense<0.000000e+00> : vector<16x16xf32>
    %4 = tpu.matmul %1, %3, %cst {dimension_numbers = #tpu.dot_dimension_numbers<[1], [0], [0], [1], [0, 0, 1, 1], [], []>} : vector<16x32xbf16>, vector<32x16xbf16>, vector<16x16xf32> -> vector<16x16xf32>
    %5 = arith.truncf %4 : vector<16x16xf32> to vector<16x16xbf16>
    %cst_5 = arith.constant 0.000000e+00 : f32
    %6 = vector.broadcast %cst_5 : f32 to vector<16x32xf32>
    %c0_6 = arith.constant 0 : index
    %c0_7 = arith.constant 0 : index
    %c0_8 = arith.constant 0 : index
    %c0_9 = arith.constant 0 : index
    %7 = vector.load %arg4[%c0_6, %c0_7, %c0_8, %c0_9] : memref<1x2x16x32xbf16, #tpu.memory_space<vmem>>, vector<1x1x16x32xbf16>
    %8 = vector.shape_cast %7 : vector<1x1x16x32xbf16> to vector<16x32xbf16>
    %cst_10 = arith.constant dense<0.000000e+00> : vector<16x32xf32>
    %9 = tpu.matmul %5, %8, %cst_10 {dimension_numbers = #tpu.dot_dimension_numbers<[1], [0], [0], [1], [0, 0, 1, 1], [], []>} : vector<16x16xbf16>, vector<16x32xbf16>, vector<16x32xf32> -> vector<16x32xf32>
    %10 = arith.mulf %9, %9 : vector<16x32xf32>
    %cst_11 = arith.constant dense<0.000000e+00> : vector<16xf32>
    %11 = vector.multi_reduction <add>, %10, %cst_11 [1] : vector<16x32xf32> to vector<16xf32>
    %12 = vector.shape_cast %11 : vector<16xf32> to vector<16x1xf32>
    %cst_12 = arith.constant 1.000000e-24 : f32
    %13 = vector.broadcast %cst_12 : f32 to vector<16x1xf32>
    %14 = arith.maximumf %12, %13 : vector<16x1xf32>
    %15 = math.rsqrt %14 : vector<16x1xf32>
    %16 = vector.broadcast %15 : vector<16x1xf32> to vector<16x32xf32>
    %17 = arith.mulf %9, %16 : vector<16x32xf32>
    %18 = arith.addf %6, %17 : vector<16x32xf32>
    %c0_13 = arith.constant 0 : index
    %c1 = arith.constant 1 : index
    %c0_14 = arith.constant 0 : index
    %c0_15 = arith.constant 0 : index
    %19 = vector.load %arg4[%c0_13, %c1, %c0_14, %c0_15] : memref<1x2x16x32xbf16, #tpu.memory_space<vmem>>, vector<1x1x16x32xbf16>
    %20 = vector.shape_cast %19 : vector<1x1x16x32xbf16> to vector<16x32xbf16>
    %cst_16 = arith.constant dense<0.000000e+00> : vector<16x32xf32>
    %21 = tpu.matmul %5, %20, %cst_16 {dimension_numbers = #tpu.dot_dimension_numbers<[1], [0], [0], [1], [0, 0, 1, 1], [], []>} : vector<16x16xbf16>, vector<16x32xbf16>, vector<16x32xf32> -> vector<16x32xf32>
    %22 = arith.mulf %21, %21 : vector<16x32xf32>
    %cst_17 = arith.constant dense<0.000000e+00> : vector<16xf32>
    %23 = vector.multi_reduction <add>, %22, %cst_17 [1] : vector<16x32xf32> to vector<16xf32>
    %24 = vector.shape_cast %23 : vector<16xf32> to vector<16x1xf32>
    %cst_18 = arith.constant 1.000000e-24 : f32
    %25 = vector.broadcast %cst_18 : f32 to vector<16x1xf32>
    %26 = arith.maximumf %24, %25 : vector<16x1xf32>
    %27 = math.rsqrt %26 : vector<16x1xf32>
    %28 = vector.broadcast %27 : vector<16x1xf32> to vector<16x32xf32>
    %29 = arith.mulf %21, %28 : vector<16x32xf32>
    %30 = arith.addf %18, %29 : vector<16x32xf32>
    %c0_19 = arith.constant 0 : index
    %c0_20 = arith.constant 0 : index
    %c0_21 = arith.constant 0 : index
    %31 = vector.load %arg5[%c0_19, %c0_20, %c0_21] : memref<1x16x32xf32, #tpu.memory_space<vmem>>, vector<1x16x32xf32>
    %32 = vector.shape_cast %31 : vector<1x16x32xf32> to vector<16x32xf32>
    %33 = vector.shape_cast %30 : vector<16x32xf32> to vector<1x16x32xf32>
    tpu.vector_store %arg5[%c0_19, %c0_20, %c0_21], %33 {strides = array<i32>} : memref<1x16x32xf32, #tpu.memory_space<vmem>>, vector<1x16x32xf32>,
    return
  }
  func.func @transform_0(%arg0: i32, %arg1: i32) -> (i32, i32, i32) {
    %c0_i32 = arith.constant 0 : i32
    %c0_i32_0 = arith.constant 0 : i32
    return %arg0, %arg1, %c0_i32 : i32, i32, i32
  }
  func.func @transform_1(%arg0: i32, %arg1: i32) -> (i32, i32, i32) {
    %c0_i32 = arith.constant 0 : i32
    %c0_i32_0 = arith.constant 0 : i32
    %c0_i32_1 = arith.constant 0 : i32
    return %arg0, %c0_i32, %c0_i32_0 : i32, i32, i32
  }
  func.func @transform_2(%arg0: i32, %arg1: i32) -> (i32, i32, i32, i32) {
    %c0_i32 = arith.constant 0 : i32
    %c0_i32_0 = arith.constant 0 : i32
    %c0_i32_1 = arith.constant 0 : i32
    %c0_i32_2 = arith.constant 0 : i32
    return %arg0, %c0_i32, %c0_i32_0, %c0_i32_1 : i32, i32, i32, i32
  }
  func.func @transform_3(%arg0: i32, %arg1: i32) -> (i32, i32, i32) {
    %c0_i32 = arith.constant 0 : i32
    %c0_i32_0 = arith.constant 0 : i32
    return %arg0, %arg1, %c0_i32 : i32, i32, i32
  }
}

module attributes {stable_mosaic.version = 11 : i64} {
  func.func @_lat_chain_kernel(%arg0: i32, %arg1: i32, %arg2: i32, %arg3: memref<1x16x32xbf16, #tpu.memory_space<vmem>>, %arg4: memref<1x32x16xbf16, #tpu.memory_space<vmem>>, %arg5: memref<1x2x16x32xbf16, #tpu.memory_space<vmem>>, %arg6: memref<2x16x32xf32, #tpu.memory_space<vmem>>) attributes {dimension_semantics = [#tpu.dimension_semantics<parallel>, #tpu.dimension_semantics<arbitrary>, #tpu.dimension_semantics<arbitrary>], iteration_bounds = array<i64: 2, 2, 1>, scalar_prefetch = 0 : i64, scratch_operands = 1 : i64, tpu.core_type = #tpu.core_type<tc>, window_params = [{transform_indices = @transform_0, window_bounds = array<i64: 1, 16, 32>}, {transform_indices = @transform_1, window_bounds = array<i64: 1, 32, 16>}, {transform_indices = @transform_2, window_bounds = array<i64: 1, 2, 16, 32>}]} {
    %c0_i32 = arith.constant 0 : i32
    %0 = arith.cmpi eq, %arg1, %c0_i32 : i32
    %c0_i32_0 = arith.constant 0 : i32
    %1 = arith.cmpi eq, %arg2, %c0_i32_0 : i32
    %2 = arith.andi %0, %1 : i1
    %3 = arith.extui %2 : i1 to i32
    %c0_i32_1 = arith.constant 0 : i32
    %4 = arith.cmpi ne, %3, %c0_i32_1 : i32
    scf.if %4 {
      %cst_13 = arith.constant 0.000000e+00 : f32
      %22 = vector.broadcast %cst_13 : f32 to vector<2x16x32xf32>
      %c0_14 = arith.constant 0 : index
      %c0_15 = arith.constant 0 : index
      %c0_16 = arith.constant 0 : index
      %23 = vector.load %arg6[%c0_14, %c0_15, %c0_16] : memref<2x16x32xf32, #tpu.memory_space<vmem>>, vector<2x16x32xf32>
      tpu.vector_store %arg6[%c0_14, %c0_15, %c0_16], %22 {strides = array<i32>} : memref<2x16x32xf32, #tpu.memory_space<vmem>>, vector<2x16x32xf32>,
    } else {
    }
    %c0 = arith.constant 0 : index
    %c0_2 = arith.constant 0 : index
    %c0_3 = arith.constant 0 : index
    %5 = vector.load %arg3[%c0, %c0_2, %c0_3] : memref<1x16x32xbf16, #tpu.memory_space<vmem>>, vector<1x16x32xbf16>
    %6 = vector.shape_cast %5 : vector<1x16x32xbf16> to vector<16x32xbf16>
    %c0_4 = arith.constant 0 : index
    %c0_5 = arith.constant 0 : index
    %c0_6 = arith.constant 0 : index
    %7 = vector.load %arg4[%c0_4, %c0_5, %c0_6] : memref<1x32x16xbf16, #tpu.memory_space<vmem>>, vector<1x32x16xbf16>
    %8 = vector.shape_cast %7 : vector<1x32x16xbf16> to vector<32x16xbf16>
    %cst = arith.constant dense<0.000000e+00> : vector<16x16xf32>
    %9 = tpu.matmul %6, %8, %cst {dimension_numbers = #tpu.dot_dimension_numbers<[1], [0], [0], [1], [0, 0, 1, 1], [], []>} : vector<16x32xbf16>, vector<32x16xbf16>, vector<16x16xf32> -> vector<16x16xf32>
    %10 = arith.truncf %9 : vector<16x16xf32> to vector<16x16xbf16>
    %c0_i32_7 = arith.constant 0 : i32
    %11 = arith.cmpi eq, %arg1, %c0_i32_7 : i32
    %12 = arith.extui %11 : i1 to i32
    %c0_i32_8 = arith.constant 0 : i32
    %13 = arith.cmpi ne, %12, %c0_i32_8 : i32
    scf.if %13 {
      %c0_13 = arith.constant 0 : index
      %c0_14 = arith.constant 0 : index
      %c0_15 = arith.constant 0 : index
      %22 = vector.load %arg6[%c0_13, %c0_14, %c0_15] : memref<2x16x32xf32, #tpu.memory_space<vmem>>, vector<1x16x32xf32>
      %23 = vector.shape_cast %22 : vector<1x16x32xf32> to vector<16x32xf32>
      %cst_16 = arith.constant dense<0.000000e+00> : vector<16x32xf32>
      %24 = tpu.matmul %10, %6, %cst_16 {dimension_numbers = #tpu.dot_dimension_numbers<[0], [0], [1], [1], [0, 1, 1, 1], [], []>} : vector<16x16xbf16>, vector<16x32xbf16>, vector<16x32xf32> -> vector<16x32xf32>
      %25 = arith.addf %23, %24 : vector<16x32xf32>
      %c0_17 = arith.constant 0 : index
      %c0_18 = arith.constant 0 : index
      %c0_19 = arith.constant 0 : index
      %26 = vector.load %arg6[%c0_17, %c0_18, %c0_19] : memref<2x16x32xf32, #tpu.memory_space<vmem>>, vector<1x16x32xf32>
      %27 = vector.shape_cast %26 : vector<1x16x32xf32> to vector<16x32xf32>
      %28 = vector.shape_cast %25 : vector<16x32xf32> to vector<1x16x32xf32>
      tpu.vector_store %arg6[%c0_17, %c0_18, %c0_19], %28 {strides = array<i32>} : memref<2x16x32xf32, #tpu.memory_space<vmem>>, vector<1x16x32xf32>,
    } else {
    }
    %c1_i32 = arith.constant 1 : i32
    %14 = arith.cmpi eq, %arg1, %c1_i32 : i32
    %15 = arith.extui %14 : i1 to i32
    %c0_i32_9 = arith.constant 0 : i32
    %16 = arith.cmpi ne, %15, %c0_i32_9 : i32
    scf.if %16 {
      %c0_13 = arith.constant 0 : index
      %c0_14 = arith.constant 0 : index
      %c0_15 = arith.constant 0 : index
      %22 = vector.load %arg6[%c0_13, %c0_14, %c0_15] : memref<2x16x32xf32, #tpu.memory_space<vmem>>, vector<1x16x32xf32>
      %23 = vector.shape_cast %22 : vector<1x16x32xf32> to vector<16x32xf32>
      %24 = arith.truncf %23 : vector<16x32xf32> to vector<16x32xbf16>
      %cst_16 = arith.constant dense<0.000000e+00> : vector<16x32xf32>
      %25 = tpu.matmul %10, %24, %cst_16 {dimension_numbers = #tpu.dot_dimension_numbers<[1], [0], [0], [1], [0, 0, 1, 1], [], []>} : vector<16x16xbf16>, vector<16x32xbf16>, vector<16x32xf32> -> vector<16x32xf32>
      %26 = arith.mulf %25, %25 : vector<16x32xf32>
      %cst_17 = arith.constant dense<0.000000e+00> : vector<16xf32>
      %27 = vector.multi_reduction <add>, %26, %cst_17 [1] : vector<16x32xf32> to vector<16xf32>
      %28 = vector.shape_cast %27 : vector<16xf32> to vector<16x1xf32>
      %cst_18 = arith.constant 1.000000e-24 : f32
      %29 = vector.broadcast %cst_18 : f32 to vector<16x1xf32>
      %30 = arith.maximumf %28, %29 : vector<16x1xf32>
      %31 = math.rsqrt %30 : vector<16x1xf32>
      %32 = vector.broadcast %31 : vector<16x1xf32> to vector<16x32xf32>
      %33 = arith.mulf %25, %32 : vector<16x32xf32>
      %34 = arith.truncf %33 : vector<16x32xf32> to vector<16x32xbf16>
      %c1 = arith.constant 1 : index
      %c0_19 = arith.constant 0 : index
      %c0_20 = arith.constant 0 : index
      %35 = vector.load %arg6[%c1, %c0_19, %c0_20] : memref<2x16x32xf32, #tpu.memory_space<vmem>>, vector<1x16x32xf32>
      %36 = vector.shape_cast %35 : vector<1x16x32xf32> to vector<16x32xf32>
      %cst_21 = arith.constant dense<0.000000e+00> : vector<16x32xf32>
      %37 = tpu.matmul %10, %34, %cst_21 {dimension_numbers = #tpu.dot_dimension_numbers<[0], [0], [1], [1], [0, 1, 1, 1], [], []>} : vector<16x16xbf16>, vector<16x32xbf16>, vector<16x32xf32> -> vector<16x32xf32>
      %38 = arith.addf %36, %37 : vector<16x32xf32>
      %c1_22 = arith.constant 1 : index
      %c0_23 = arith.constant 0 : index
      %c0_24 = arith.constant 0 : index
      %39 = vector.load %arg6[%c1_22, %c0_23, %c0_24] : memref<2x16x32xf32, #tpu.memory_space<vmem>>, vector<1x16x32xf32>
      %40 = vector.shape_cast %39 : vector<1x16x32xf32> to vector<16x32xf32>
      %41 = vector.shape_cast %38 : vector<16x32xf32> to vector<1x16x32xf32>
      tpu.vector_store %arg6[%c1_22, %c0_23, %c0_24], %41 {strides = array<i32>} : memref<2x16x32xf32, #tpu.memory_space<vmem>>, vector<1x16x32xf32>,
    } else {
    }
    %c1_i32_10 = arith.constant 1 : i32
    %17 = arith.cmpi eq, %arg1, %c1_i32_10 : i32
    %c0_i32_11 = arith.constant 0 : i32
    %18 = arith.cmpi eq, %arg2, %c0_i32_11 : i32
    %19 = arith.andi %17, %18 : i1
    %20 = arith.extui %19 : i1 to i32
    %c0_i32_12 = arith.constant 0 : i32
    %21 = arith.cmpi ne, %20, %c0_i32_12 : i32
    scf.if %21 {
      %c0_13 = arith.constant 0 : index
      %c0_14 = arith.constant 0 : index
      %c0_15 = arith.constant 0 : index
      %22 = vector.load %arg6[%c0_13, %c0_14, %c0_15] : memref<2x16x32xf32, #tpu.memory_space<vmem>>, vector<2x16x32xf32>
      %23 = arith.truncf %22 : vector<2x16x32xf32> to vector<2x16x32xbf16>
      %c0_16 = arith.constant 0 : index
      %c0_17 = arith.constant 0 : index
      %c0_18 = arith.constant 0 : index
      %c0_19 = arith.constant 0 : index
      %24 = vector.load %arg5[%c0_16, %c0_17, %c0_18, %c0_19] : memref<1x2x16x32xbf16, #tpu.memory_space<vmem>>, vector<1x2x16x32xbf16>
      %25 = vector.shape_cast %24 : vector<1x2x16x32xbf16> to vector<2x16x32xbf16>
      %26 = vector.shape_cast %23 : vector<2x16x32xbf16> to vector<1x2x16x32xbf16>
      tpu.vector_store %arg5[%c0_16, %c0_17, %c0_18, %c0_19], %26 {strides = array<i32>} : memref<1x2x16x32xbf16, #tpu.memory_space<vmem>>, vector<1x2x16x32xbf16>,
    } else {
    }
    return
  }
  func.func @transform_0(%arg0: i32, %arg1: i32, %arg2: i32) -> (i32, i32, i32) {
    %c0_i32 = arith.constant 0 : i32
    %c0_i32_0 = arith.constant 0 : i32
    return %arg0, %arg2, %c0_i32 : i32, i32, i32
  }
  func.func @transform_1(%arg0: i32, %arg1: i32, %arg2: i32) -> (i32, i32, i32) {
    %c0_i32 = arith.constant 0 : i32
    %c0_i32_0 = arith.constant 0 : i32
    %c0_i32_1 = arith.constant 0 : i32
    return %arg0, %c0_i32, %c0_i32_0 : i32, i32, i32
  }
  func.func @transform_2(%arg0: i32, %arg1: i32, %arg2: i32) -> (i32, i32, i32, i32) {
    %c0_i32 = arith.constant 0 : i32
    %c0_i32_0 = arith.constant 0 : i32
    %c0_i32_1 = arith.constant 0 : i32
    %c0_i32_2 = arith.constant 0 : i32
    return %arg0, %c0_i32, %c0_i32_0, %c0_i32_1 : i32, i32, i32, i32
  }
}

</mosaic_0001>

<bundles_post_ra>
// kernel: hyper_behavior_gcn_forward.3
= control target key start
LH: loop header
LB: loop body
LE: loop exit
PB: predicated region body
PF: predicated region fallthrough
CT: control target
= control target key end

     0   :  { %s648_s12 = smov 0   ;;  %s650_s13 = smov 0   ;;  %s704_s0 = inlined_call_operand.vmem [shape: bf16[2,16,32], index: 0, kind: input, shape index: {}]   ;;  %s705_s1 = inlined_call_operand.vmem [shape: bf16[2,32,16], index: 1, kind: input, shape index: {}]   ;;  %s706_s2 = inlined_call_operand.vmem [shape: bf16[2,2,16,32], index: 2, kind: input, shape index: {}]   ;;  %s707_s3 = inlined_call_operand.vmem [shape: f32[2,16,32], index: 3, kind: output, shape index: {}]  }
   0x1   :  { %s652_s14 = smov 0  }
   0x2 LB: > { %s25_s15 = sadd.s32 1, %s622_s13  ;;  %p527_p0 = scmp.ge.s32.totalorder %s626_s14, 1  ;;  %s626_s14 = sphi %s652_s14, %s13_s14   ;;  %s622_s13 = sphi %s650_s13, %s709_s13   ;;  %s618_s12 = sphi %s648_s12, %s708_s12  }
   0x3   : > { %p27_p1 = scmp.ge.s32.totalorder %s25_s15, 2  ;;  %p178_p2 = scmp.lt.s32.totalorder %s626_s14, 3 }
   0x5   : > { %s711_s15 = smov (%p27_p1, %s25_s15), 0  ;;  %p179_p3 = pnand %p527_p0, %p178_p2 }
   0x6   : > { %p221_p4 = scmp.lt.s32.totalorder (!%p179_p3), %s618_s12, 1 }
   0x7   : > { %182 = sbr.rel (%p179_p3) target bundleno = 443 (0x1bb), region = 32 }
   0xc   : > { %s713_s12 = smov (!%p221_p4, %s618_s12), 1  ;;  %vm274_vm0 = vcmask 261120   ;;  %vm301_vm1 = vcmask 130048  }
   0xd   : > { %s666_s16 = sshll.u32 %s713_s12, 4  ;;  %s563_s20 = sshll.u32 %s713_s12, 3 }
   0xe   : > { %s234_s19 = scalar_lea.vmem %s705_s1, %s666_s16  ;;  %s228_s23 = scalar_lea.vmem %s704_s0, %s563_s20 }
   0xf   : > { %v569_v0 = vld [vmem:[%s234_s19 + $0x8] sm:$0xff]  ;;  %v568_v1 = vld [vmem:[%s234_s19] sm:$0xff]  ;;  %s239_s26 = scalar_lea.vmem %s706_s2, %s666_s16  ;;  %s248_s29 = scalar_lea.vmem %s707_s3, %s666_s16 }
  0x10   : > { %284 = vmatpush.bf16.msra.mxu0 %v569_v0  ;;  %v567_v2 = vld [vmem:[%s228_s23] sm:$0xff]  ;;  %v571_v4 = vld [vmem:[%s239_s26 + $0x8] sm:$0xff] }
  0x11   : > { %v570_v3 = vld [vmem:[%s239_s26] sm:$0xff]  ;;  %369 = vmatpush.bf16.msra.mxu2 %v571_v4 }
  0x12   : > { %312 = vmatpush.bf16.msra.mxu1 %v570_v3 }
  0x14   : > { %285 = vmatpush.bf16.msra.mxu0 %v568_v1 }
  0x17   : > { %548 = vmatmul.msk.bf16.vlgmr.msra.gmra.mxu0 %vm274_vm0, %v567_v2 }
  0x94   : > { %v287_v5 = vpop.f32.mrf.mxu0 }
  0x9c   : > { %v289_v6 = vpop.f32.mrf.mxu0 }
  0x9d   : > { %v292_v7 = vpack.c.bf16 %v289_v6, %v287_v5 }
  0x9f   : > { %553 = vmatmul.msk.bf16.vlgmr.msra.gmra.mxu1 %vm301_vm1, %v292_v7  ;;  %560 = vmatmul.msk.bf16.vlgmr.msra.gmra.mxu2 %vm301_vm1, %v292_v7 }
 0x11c   : > { %v314_v8 = vpop.f32.mrf.mxu1 }
 0x11d   : > { %v319_v9 = vmul.f32 %v314_v8, %v314_v8 }
 0x11f   : > { %v321_v10 = vsel %vm274_vm0, %v319_v9, 0.0 }
 0x120   : > { %322 = vadd.xlane.f32.xlu0 %v321_v10 }
 0x122   : > { %v371_v11 = vpop.f32.mrf.mxu2 }
 0x123   : > { %v376_v12 = vmul.f32 %v371_v11, %v371_v11 }
 0x124   : > { %v681_v13 = vpop.f32.mrf.mxu1 }
 0x125   : > { %v320_v14 = vmul.f32 %v681_v13, %v681_v13  ;;  %v378_v15 = vsel %vm274_vm0, %v376_v12, 0.0 }
 0x126   : > { %379 = vadd.xlane.f32.xlu1 %v378_v15 }
 0x127   : > { %v324_v16 = vsel %vm274_vm0, %v320_v14, 0.0 }
 0x128   : > { %325 = vadd.xlane.f32.xlu0 %v324_v16 }
 0x12a   : > { %v373_v17 = vpop.f32.mrf.mxu2 }
 0x12b   : > { %v377_v18 = vmul.f32 %v373_v17, %v373_v17 }
 0x12d   : > { %v381_v19 = vsel %vm274_vm0, %v377_v18, 0.0 }
 0x12e   : > { %382 = vadd.xlane.f32.xlu1 %v381_v19 }
 0x193   : > { %v323_v20 = vpop.xlane.xlu0 %322 }
 0x194   : > { %v327_v21 = vmax.f32 %v323_v20, 1e-24 }
 0x196   : > { %596 = vrsqrt.f32 %v327_v21  ;;  %vm335_vm3 = vweird.f32 %v327_v21 }
 0x199   : > { %v380_v22 = vpop.xlane.xlu1 %379 }
 0x19a   : > { %v384_v23 = vmax.f32 %v380_v22, 1e-24 }
 0x19b   : > { %v326_v24 = vpop.xlane.xlu0 %325 }
 0x19c   : > { %v597_v25 = vpop.eup %596  ;;  %598 = vrsqrt.f32 %v384_v23  ;;  %v328_v26 = vmax.f32 %v326_v24, 1e-24  ;;  %vm392_vm6 = vweird.f32 %v384_v23 }
 0x19d   : > { %v330_v27 = vmul.f32 %v597_v25, %v327_v21  ;;  %vm336_vm2 = vweird.f32 %v597_v25 }
 0x19e   : > { %600 = vrsqrt.f32 %v328_v26  ;;  %vm337_vm5 = vmor %vm335_vm3, %vm336_vm2  ;;  %vm345_vm9 = vweird.f32 %v328_v26 }
 0x19f   : > { %v331_v28 = vmul.f32 %v597_v25, %v330_v27 }
 0x1a1   : > { %v332_v29 = vmul.f32 0.5, %v331_v28  ;;  %v383_v30 = vpop.xlane.xlu1 %382 }
 0x1a2   : > { %v599_v31 = vpop.eup %598  ;;  %v385_v32 = vmax.f32 %v383_v30, 1e-24 }
 0x1a3   : > { %v333_v33 = vsub.f32 1.5, %v332_v29  ;;  %v387_v34 = vmul.f32 %v599_v31, %v384_v23  ;;  %vm393_vm4 = vweird.f32 %v599_v31 }
 0x1a4   : > { %v601_v35 = vpop.eup %600  ;;  %602 = vrsqrt.f32 %v385_v32  ;;  %vm394_vm7 = vmor %vm392_vm6, %vm393_vm4  ;;  %vm402_vm12 = vweird.f32 %v385_v32 }
 0x1a5   : > { %v388_v36 = vmul.f32 %v599_v31, %v387_v34  ;;  %v340_v37 = vmul.f32 %v601_v35, %v328_v26  ;;  %v334_v38 = vmul.f32 %v597_v25, %v333_v33  ;;  %vm346_vm8 = vweird.f32 %v601_v35 }
 0x1a6   : > { %vm347_vm11 = vmor %vm345_vm9, %vm346_vm8 }
 0x1a7   : > { %v389_v39 = vmul.f32 0.5, %v388_v36  ;;  %v341_v40 = vmul.f32 %v601_v35, %v340_v37  ;;  %v338_v44 = vsel %vm337_vm5, %v597_v25, %v334_v38 }
 0x1a8   : > { %v349_v50 = vmul.f32 %v338_v44, %v314_v8 }
 0x1a9   : > { %v390_v41 = vsub.f32 1.5, %v389_v39  ;;  %v342_v42 = vmul.f32 0.5, %v341_v40 }
 0x1aa   : > { %v603_v43 = vpop.eup %602 }
 0x1ab   : > { %v391_v45 = vmul.f32 %v599_v31, %v390_v41  ;;  %v343_v46 = vsub.f32 1.5, %v342_v42  ;;  %v397_v47 = vmul.f32 %v603_v43, %v385_v32  ;;  %vm403_vm10 = vweird.f32 %v603_v43 }
 0x1ac   : > { %vm404_vm13 = vmor %vm402_vm12, %vm403_vm10 }
 0x1ad   : > { %v395_v48 = vsel %vm394_vm7, %v599_v31, %v391_v45  ;;  %v398_v49 = vmul.f32 %v603_v43, %v397_v47  ;;  %v344_v52 = vmul.f32 %v601_v35, %v343_v46 }
 0x1ae   : > { %v406_v51 = vmul.f32 %v395_v48, %v371_v11 }
 0x1af   : > { %v399_v53 = vmul.f32 0.5, %v398_v49  ;;  %v348_v56 = vsel %vm347_vm11, %v601_v35, %v344_v52 }
 0x1b0   : > { %v408_v54 = vadd.f32 %v406_v51, %v349_v50  ;;  %v350_v59 = vmul.f32 %v348_v56, %v681_v13 }
 0x1b1   : > { %v400_v55 = vsub.f32 1.5, %v399_v53 }
 0x1b2   : > { %410 = vst.msk [vmem:[%s248_s29] sm:$0xff] %vm274_vm0, %v408_v54 }
 0x1b3   : > { %v401_v57 = vmul.f32 %v603_v43, %v400_v55 }
 0x1b5   : > { %v405_v58 = vsel %vm404_vm13, %v603_v43, %v401_v57 }
 0x1b6   : > { %v407_v60 = vmul.f32 %v405_v58, %v373_v17 }
 0x1b8   : > { %v409_v61 = vadd.f32 %v407_v60, %v350_v59 }
 0x1ba   : > { %411 = vst.msk [vmem:[%s248_s29 + $0x8] sm:$0xff] %vm274_vm0, %v409_v61 }
 0x1bb PF: > { %s13_s14 = sadd.s32 1, %s626_s14   ;;  %s708_s12 = smov %s622_s13 }
 0x1bc   : > { %p10_p5 = scmp.ge.s32.totalorder %s13_s14, 4   ;;  %s709_s13 = smov %s711_s15 }
 0x1be   :  { %12 = sbr.rel (!%p10_p5) target bundleno = 2 (0x2), region = 69 }

// kernel: hyper_behavior_gcn_forward.2
= control target key start
LH: loop header
LB: loop body
LE: loop exit
PB: predicated region body
PF: predicated region fallthrough
CT: control target
= control target key end

     0   :  { %s643_s9 = smov 0   ;;  %s645_s10 = smov 0   ;;  %s720_s0 = inlined_call_operand.vmem [shape: bf16[2,16,32], index: 0, kind: input, shape index: {}]   ;;  %s721_s1 = inlined_call_operand.vmem [shape: bf16[2,32,16], index: 1, kind: input, shape index: {}]   ;;  %s722_s2 = inlined_call_operand.vmem [shape: bf16[2,2,16,32], index: 2, kind: output, shape index: {}]  }
   0x1   :  { %s647_s11 = smov 0   ;;  %s649_s12 = smov 0  }
   0x2   :  { %s651_s13 = smov 0  }
   0x3 LB: > { %s27_s14 = sadd.s32 1, %s617_s11  ;;  %s31_s15 = sadd.s32 1, %s621_s12  ;;  %s625_s13 = sphi %s651_s13, %s12_s13   ;;  %s621_s12 = sphi %s649_s12, %s726_s12   ;;  %s617_s11 = sphi %s647_s11, %s725_s11   ;;  %s613_s10 = sphi %s645_s10, %s724_s10   ;;  %s609_s9 = sphi %s643_s9, %s723_s9  }
   0x4   : > { %p29_p0 = scmp.ge.s32.totalorder %s27_s14, 2  ;;  %p503_p1 = scmp.ge.s32.totalorder %s625_s13, 1 }
   0x5   : > { %p148_p2 = scmp.lt.s32.totalorder %s625_s13, 5 }
   0x6   : > { %s728_s14 = smov (%p29_p0, %s27_s14), 0  ;;  %s730_s15 = smov (!%p29_p0, %s31_s15), %s621_s12 }
   0x7   : > { %p149_p3 = pnand %p503_p1, %p148_p2  ;;  %p33_p4 = scmp.ge.s32.totalorder %s730_s15, 2 }
   0x8   : > { %p180_p5 = scmp.lt.s32.totalorder (!%p149_p3), %s613_s10, 1  ;;  %p200_p6 = scmp.eq.s32.totalorder (!%p149_p3), %s609_s9, 0 }
   0x9   : > { %s732_s15 = smov (%p33_p4, %s730_s15), 0  ;;  %152 = sbr.rel (%p149_p3) target bundleno = 913 (0x391), region = 28 }
   0xe   : > { %s734_s10 = smov (!%p180_p5, %s613_s10), 1  ;;  %205 = sbr.rel (!%p200_p6) target bundleno = 19 (0x13), region = 32  ;;  %vm206_vm0 = vcmask (%p200_p6), 261120   ;;  %v627_v0 = vmov (%p200_p6), 0.0  }
   0xf   : > { %s532_s16 = sshll.u32 %s734_s10, 3  ;;  %s533_s17 = sshll.u32 %s734_s10, 4  ;;  %207 = vst.msk [vmem:[#allocation2] sm:$0xff] (%p200_p6), %vm206_vm0, %v627_v0 }
  0x10   : > { %s187_s20 = scalar_lea.vmem %s720_s0, %s532_s16  ;;  %s193_s23 = scalar_lea.vmem %s721_s1, %s533_s17  ;;  %208 = vst.msk [vmem:[#allocation2 + $0x8] sm:$0xff] (%p200_p6), %vm206_vm0, %v627_v0 }
  0x11   : > { %s685_s26 = scalar_lea.vmem %s722_s2, %s533_s17  ;;  %209 = vst.msk [vmem:[#allocation2 + $0x10] sm:$0xff] (%p200_p6), %vm206_vm0, %v627_v0 }
  0x12   : > { %210 = vst.msk [vmem:[#allocation2 + $0x18] sm:$0xff] (%p200_p6), %vm206_vm0, %v627_v0 }
  0x13 PF: > { %v538_v1 = vld [vmem:[%s193_s23 + $0x8] sm:$0xff]  ;;  %v537_v2 = vld [vmem:[%s193_s23] sm:$0xff]  ;;  %vm234_vm1 = vcmask 261120   ;;  %p524_p7 = scmp.ne.s32.totalorder %s609_s9, 0 }
  0x14   : > { %244 = vmatpush.bf16.msra.mxu0 %v538_v1  ;;  %v536_v3 = vld [vmem:[%s187_s20] sm:$0xff] }
  0x18   : > { %245 = vmatpush.bf16.msra.mxu0 %v537_v2 }
  0x1b   : > { %523 = vmatmul.msk.bf16.vlgmr.msra.gmra.mxu0 %vm234_vm1, %v536_v3 }
  0x98   : > { %v247_v4 = vpop.f32.mrf.mxu0 }
  0x9d   : > { %255 = sbr.rel (%p524_p7) target bundleno = 473 (0x1d9), region = 36 }
  0xa0   : > { %v249_v5 = vpop.f32.mrf.mxu0 }
  0xa1   : > { %v252_v6 = vpack.c.bf16 %v249_v5, %v247_v4 }
  0xa2   : > { %286 = vmatpush.bf16.msra.mxu0 %v536_v3  ;;  %vm275_vm2 = vcmask 130048   ;;  %v256_v8 = vld [vmem:[#allocation2] sm:$0xff]  ;;  %v257_v11 = vld [vmem:[#allocation2 + $0x8] sm:$0xff] }
  0xa3   : > { %258 = vxpose.xlu0.c.b16.start.end [1/1] (short) (narrow) %v252_v6, 16 }
 0x14f   : > { %v266_v7 = vpop.trf.xlu0 }
 0x150   : > { %525 = vmatmul.msk.bf16.vlgmr.msra.gmra.mxu0 %vm275_vm2, %v266_v7 }
 0x1cd   : > { %v288_v9 = vpop.f32.mrf.mxu0 }
 0x1ce   : > { %v293_v10 = vadd.f32 %v288_v9, %v256_v8 }
 0x1d0   : > { %295 = vst.msk [vmem:[#allocation2] sm:$0xff] %vm234_vm1, %v293_v10 }
 0x1d5   : > { %v290_v12 = vpop.f32.mrf.mxu0 }
 0x1d6   : > { %v294_v13 = vadd.f32 %v290_v12, %v257_v11 }
 0x1d8   : > { %296 = vst.msk [vmem:[#allocation2 + $0x8] sm:$0xff] %vm234_vm1, %v294_v13 }
 0x1d9 PF: > { %p297_p8 = scmp.eq.s32.totalorder %s609_s9, 1  ;;  %p526_p9 = scmp.ne.s32.totalorder %s609_s9, 1 }
 0x1db   : > { %300 = sbr.rel (%p526_p9) target bundleno = 903 (0x387), region = 40 }
 0x1e0   : > { %v301_v14 = vld [vmem:[#allocation2] sm:$0xff]  ;;  %v302_v15 = vld [vmem:[#allocation2 + $0x8] sm:$0xff]  ;;  %358 = vxpose.xlu1.c.b16.start.end [1/1] (short) (narrow) %v252_v6, 16  ;;  %vm304_vm3 = vcmask 130048   ;;  %v356_v45 = vld [vmem:[#allocation2 + $0x10] sm:$0xff] }
 0x1e1   : > { %v303_v16 = vpack.c.bf16 %v302_v15, %v301_v14  ;;  %v357_v48 = vld [vmem:[#allocation2 + $0x18] sm:$0xff] }
 0x1e3   : > { %315 = vmatpush.bf16.msra.mxu0 %v303_v16 }
 0x1e6   : > { %527 = vmatmul.msk.bf16.vlgmr.msra.gmra.mxu0 %vm304_vm3, %v252_v6 }
 0x263   : > { %v317_v17 = vpop.f32.mrf.mxu0 }
 0x264   : > { %v322_v18 = vmul.f32 %v317_v17, %v317_v17 }
 0x266   : > { %v324_v19 = vsel %vm234_vm1, %v322_v18, 0.0 }
 0x267   : > { %325 = vadd.xlane.f32.xlu0 %v324_v19 }
 0x26b   : > { %v319_v20 = vpop.f32.mrf.mxu0 }
 0x26c   : > { %v323_v21 = vmul.f32 %v319_v20, %v319_v20 }
 0x26e   : > { %v327_v22 = vsel %vm234_vm1, %v323_v21, 0.0 }
 0x26f   : > { %328 = vadd.xlane.f32.xlu0 %v327_v22 }
 0x28c   : > { %v366_v44 = vpop.trf.xlu1 }
 0x2da   : > { %v326_v23 = vpop.xlane.xlu0 %325 }
 0x2db   : > { %v330_v24 = vmax.f32 %v326_v23, 1e-24 }
 0x2dd   : > { %583 = vrsqrt.f32 %v330_v24  ;;  %vm338_vm5 = vweird.f32 %v330_v24 }
 0x2e2   : > { %v329_v25 = vpop.xlane.xlu0 %328 }
 0x2e3   : > { %v584_v26 = vpop.eup %583  ;;  %v331_v27 = vmax.f32 %v329_v25, 1e-24 }
 0x2e4   : > { %v333_v28 = vmul.f32 %v584_v26, %v330_v24  ;;  %vm339_vm4 = vweird.f32 %v584_v26 }
 0x2e5   : > { %585 = vrsqrt.f32 %v331_v27  ;;  %vm340_vm7 = vmor %vm338_vm5, %vm339_vm4  ;;  %vm348_vm8 = vweird.f32 %v331_v27 }
 0x2e6   : > { %v334_v29 = vmul.f32 %v584_v26, %v333_v28 }
 0x2e8   : > { %v335_v30 = vmul.f32 0.5, %v334_v29 }
 0x2ea   : > { %v336_v32 = vsub.f32 1.5, %v335_v30 }
 0x2eb   : > { %v586_v31 = vpop.eup %585 }
 0x2ec   : > { %v343_v33 = vmul.f32 %v586_v31, %v331_v27  ;;  %v337_v36 = vmul.f32 %v584_v26, %v336_v32  ;;  %vm349_vm6 = vweird.f32 %v586_v31 }
 0x2ed   : > { %vm350_vm9 = vmor %vm348_vm8, %vm349_vm6 }
 0x2ee   : > { %v344_v34 = vmul.f32 %v586_v31, %v343_v33  ;;  %v341_v38 = vsel %vm340_vm7, %v584_v26, %v337_v36 }
 0x2ef   : > { %v352_v41 = vmul.f32 %v341_v38, %v317_v17 }
 0x2f0   : > { %v345_v35 = vmul.f32 0.5, %v344_v34 }
 0x2f2   : > { %v346_v37 = vsub.f32 1.5, %v345_v35 }
 0x2f4   : > { %v347_v39 = vmul.f32 %v586_v31, %v346_v37 }
 0x2f6   : > { %v351_v40 = vsel %vm350_vm9, %v586_v31, %v347_v39 }
 0x2f7   : > { %v353_v42 = vmul.f32 %v351_v40, %v319_v20 }
 0x2f9   : > { %v354_v43 = vpack.c.bf16 %v353_v42, %v352_v41 }
 0x2fb   : > { %384 = vmatpush.bf16.msra.mxu1 %v354_v43 }
 0x2fe   : > { %528 = vmatmul.msk.bf16.vlgmr.msra.gmra.mxu1 %vm304_vm3, %v366_v44 }
 0x37b   : > { %v386_v46 = vpop.f32.mrf.mxu1 }
 0x37c   : > { %v391_v47 = vadd.f32 %v386_v46, %v356_v45 }
 0x37e   : > { %393 = vst.msk [vmem:[#allocation2 + $0x10] sm:$0xff] %vm234_vm1, %v391_v47 }
 0x383   : > { %v388_v49 = vpop.f32.mrf.mxu1 }
 0x384   : > { %v392_v50 = vadd.f32 %v388_v49, %v357_v48 }
 0x386   : > { %394 = vst.msk [vmem:[#allocation2 + $0x18] sm:$0xff] %vm234_vm1, %v392_v50 }
 0x387 PF: > { %398 = sbr.rel (!%p297_p8) target bundleno = 913 (0x391), region = 44  ;;  %v399_v51 = vld [vmem:[#allocation2] sm:$0xff] (%p297_p8)  ;;  %vm407_vm10 = vcmask (%p297_p8), 257024   ;;  %v400_v52 = vld [vmem:[#allocation2 + $0x8] sm:$0xff] (%p297_p8)  ;;  %v401_v53 = vld [vmem:[#allocation2 + $0x10] sm:$0xff] (%p297_p8) }
 0x388   : > { %v403_v54 = vpack.c.bf16 (%p297_p8), %v399_v51, %v399_v51  ;;  %v404_v55 = vpack.c.bf16 (%p297_p8), %v400_v52, %v400_v52  ;;  %v405_v56 = vpack.c.bf16 (%p297_p8), %v401_v53, %v401_v53 }
 0x38a   : > { %408 = vst.msk [vmem:[%s685_s26] sm:$0xf] (%p297_p8), %vm407_vm10, %v403_v54 }
 0x38b   : > { %409 = vst.msk [vmem:[%s685_s26 + $0x4] sm:$0xf] (%p297_p8), %vm407_vm10, %v404_v55 }
 0x38c   : > { %410 = vst.msk [vmem:[%s685_s26 + $0x8] sm:$0xf] %vm407_vm10, %v405_v56 }
 0x38d   : > { %v402_v57 = vld [vmem:[#allocation2 + $0x18] sm:$0xff] }
 0x38e   : > { %v406_v58 = vpack.c.bf16 %v402_v57, %v402_v57 }
 0x390   : > { %411 = vst.msk [vmem:[%s685_s26 + $0xc] sm:$0xf] %vm407_vm10, %v406_v58 }
 0x391 PF: > { %s12_s13 = sadd.s32 1, %s625_s13   ;;  %s723_s9 = smov %s617_s11 }
 0x392   : > { %p9_p10 = scmp.ge.s32.totalorder %s12_s13, 6   ;;  %s724_s10 = smov %s621_s12 }
 0x393   : > { %s725_s11 = smov %s728_s14  ;;  %s726_s12 = smov %s732_s15 }
 0x394   :  { %11 = sbr.rel (!%p9_p10) target bundleno = 3 (0x3), region = 78 }

</bundles_post_ra>
